<compile_context>
chip_gen: v7x
topology: tpu7x:2x2x1
jax: 0.10.0
libtpu: 0.0.40
codegen_flags: <defaults>
</compile_context>

<pallas_src>
import jax
import jax.numpy as jnp
from jax.experimental import pallas as pl
from jax.experimental.pallas import tpu as pltpu

C = 16  # in/out channels of both 1x1 convs (fixed by the module)


def _fused_kernel(x_ref, params_ref, o_ref):
    # x_ref: (bt, C, tile_px) -- channels on sublanes, pixels on lanes.
    x = x_ref[...]
    bt = x.shape[0]

    # params: [ W1^T (C,C) | b1 (C,1) | W2^T (C,C) | b2 (C,1) ] packed on lanes.
    w1t = params_ref[:, 0:C]                              # (C, C)
    b1 = params_ref[:, C:C + 1][None]                     # (1, C, 1)
    w2t = params_ref[:, C + 1:2 * C + 1]                  # (C, C)
    b2 = params_ref[:, 2 * C + 1:2 * C + 2][None]         # (1, C, 1)

    # Tiny broadcasts so both einsums are plain batched MXU matmuls with the
    # result already in (batch, out_ch, pixel) layout (no post-transpose).
    w1b = jnp.broadcast_to(w1t[None], (bt, C, C))
    w2b = jnp.broadcast_to(w2t[None], (bt, C, C))

    # conv_1 (1x1) + bias, relu_1
    h1 = jnp.einsum("boc,bcp->bop", w1b, x, preferred_element_type=jnp.float32) + b1
    v1 = jnp.maximum(h1, 0.0)
    # where(v1 > 0, v1, 0.3*v1) after ReLU == identity -> folded away.
    # conv_2 (1x1) + bias, relu_2
    h2 = jnp.einsum("boc,bcp->bop", w2b, v1, preferred_element_type=jnp.float32) + b2
    o_ref[...] = jnp.maximum(h2, 0.0).astype(o_ref.dtype)


def _choose_tiles(N, P, *, max_tile_px=16384, target_bp=32768):
    """Pick (batch_tile, pixel_tile).

    pixel tile: full extent when it fits (always a legal block dim), otherwise
    a lane-dense multiple of 128 with a masked partial last block (cdiv grid).
    batch tile: folded so each step moves ~2 MiB of x (bt*tile_px ~ target_bp,
    amortizing the ~0.35us per-step pipeline overhead), while keeping >= 2
    total grid steps so both v7x TensorCores get work.
    """
    tile_px = P if P <= max_tile_px else max_tile_px
    bt = max(1, min(N, target_bp // max(tile_px, 1)))

    def n_steps(bt_, tpx_):
        return (-(-N // bt_)) * (-(-P // tpx_))

    if n_steps(bt, tile_px) < 2:
        if N >= 2:
            bt = -(-N // 2)                     # split the batch across 2 steps
        elif P >= 256:
            tile_px = 128 * (-(-P // 256))      # ~round_up(P/2, 128) -> 2 px blocks
    return bt, tile_px


def fused_forward(x_nchw, w1, b1, w2, b2, *, max_tile_px=16384, target_bp=32768):
    """x_nchw: (N, 16, H, W) f32.  w1/w2: (C_in, C_out) f32, b1/b2: (C_out,) f32."""
    N, Cin, H, W = x_nchw.shape
    assert Cin == C
    P = H * W

    # Free reshape: NCHW -> (N, C, P).  No transpose / relayout.
    x_r = x_nchw.reshape(N, C, P)

    # Pack the 4 tiny constants into a single resident operand (one prologue DMA).
    params = jnp.concatenate(
        [w1.T, b1.reshape(C, 1), w2.T, b2.reshape(C, 1)], axis=1
    ).astype(jnp.float32)                                  # (C, 2C+2) = (16, 34)

    bt, tile_px = _choose_tiles(N, P, max_tile_px=max_tile_px, target_bp=target_bp)
    grid = (pl.cdiv(N, bt), pl.cdiv(P, tile_px))

    out_r = pl.pallas_call(
        _fused_kernel,
        out_shape=jax.ShapeDtypeStruct((N, C, P), jnp.float32),
        grid_spec=pl.GridSpec(
            grid=grid,
            in_specs=[
                pl.BlockSpec((bt, C, tile_px), lambda b, p: (b, 0, p)),   # x slab
                pl.BlockSpec((C, 2 * C + 2), lambda b, p: (0, 0)),        # packed consts
            ],
            out_specs=pl.BlockSpec((bt, C, tile_px), lambda b, p: (b, 0, p)),
        ),
        compiler_params=pltpu.CompilerParams(
            dimension_semantics=("parallel", "parallel"),
        ),
    )(x_r, params)

    # Free reshape back: (N, C, P) -> (N, C, H, W)
    return out_r.reshape(N, C, H, W)


def reference_forward(x_nchw, w1, b1, w2, b2):
    """Pure-JAX reference matching the PyTorch module semantics exactly."""
    N, _, H, W = x_nchw.shape
    x_rows = jnp.transpose(x_nchw, (0, 2, 3, 1)).reshape(-1, C)
    v1 = jnp.maximum(x_rows @ w1 + b1, 0.0)
    v4 = jnp.where(v1 > 0.0, v1, v1 * 0.3)
    v5 = jnp.maximum(v4 @ w2 + b2, 0.0)
    return v5.reshape(N, H, W, C).transpose(0, 3, 1, 2)


if __name__ == "__main__":
    key = jax.random.PRNGKey(0)
    kx, kw1, kb1, kw2, kb2 = jax.random.split(key, 5)

    # Deterministic parameter init (stored directly as (C_in, C_out) matmul
    # weights; a real PyTorch Conv2d weight would map as weight[:, :, 0, 0].T).
    scale = 1.0 / jnp.sqrt(jnp.float32(C))
    w1 = jax.random.uniform(kw1, (C, C), jnp.float32, -scale, scale)
    b1 = jax.random.uniform(kb1, (C,), jnp.float32, -scale, scale)
    w2 = jax.random.uniform(kw2, (C, C), jnp.float32, -scale, scale)
    b2 = jax.random.uniform(kb2, (C,), jnp.float32, -scale, scale)

    # Primary small input consistent with the module: batch=2, 16 ch, 16x16.
    x = jax.random.normal(kx, (2, C, 16, 16), dtype=jnp.float32)
    out = jax.block_until_ready(fused_forward(x, w1, b1, w2, b2))
    ref = reference_forward(x, w1, b1, w2, b2)
    assert out.shape == (2, C, 16, 16)
    assert jnp.allclose(out, ref, atol=1e-5, rtol=1e-5)

    # Extra shape checks exercising the cdiv / partial-block paths:
    #  (3, ...): odd batch -> masked partial batch block
    #  (1, C, 160, 160): P=25600 > max tile -> masked partial pixel block, 2 steps
    for shape in ((3, C, 16, 16), (1, C, 160, 160)):
        xk = jax.random.normal(kx, shape, dtype=jnp.float32)
        o = jax.block_until_ready(fused_forward(xk, w1, b1, w2, b2))
        r = reference_forward(xk, w1, b1, w2, b2)
        assert jnp.allclose(o, r, atol=1e-5, rtol=1e-5)

    print("KERNEL_OK")
</pallas_src>

<mosaic_0001>
module attributes {stable_mosaic.version = 11 : i64} {
  func.func @_fused_kernel(%arg0: i32, %arg1: i32, %arg2: memref<1x16x256xf32, #tpu.memory_space<vmem>>, %arg3: memref<16x34xf32, #tpu.memory_space<vmem>>, %arg4: memref<1x16x256xf32, #tpu.memory_space<vmem>>) attributes {dimension_semantics = [#tpu.dimension_semantics<parallel>, #tpu.dimension_semantics<parallel>], iteration_bounds = array<i64: 2, 1>, scalar_prefetch = 0 : i64, scratch_operands = 0 : i64, tpu.core_type = #tpu.core_type<tc>, window_params = [{transform_indices = @transform_0, window_bounds = array<i64: 1, 16, 256>}, {pipeline_mode = #tpu.pipeline_mode<synchronous>, transform_indices = @transform_1, window_bounds = array<i64: 16, 34>}, {transform_indices = @transform_2, window_bounds = array<i64: 1, 16, 256>}]} {
    %c0 = arith.constant 0 : index
    %c0_0 = arith.constant 0 : index
    %c0_1 = arith.constant 0 : index
    %0 = vector.load %arg2[%c0, %c0_0, %c0_1] : memref<1x16x256xf32, #tpu.memory_space<vmem>>, vector<1x16x256xf32>
    %c0_2 = arith.constant 0 : index
    %c0_3 = arith.constant 0 : index
    %1 = vector.load %arg3[%c0_2, %c0_3] : memref<16x34xf32, #tpu.memory_space<vmem>>, vector<16x16xf32>
    %c0_4 = arith.constant 0 : index
    %c16 = arith.constant 16 : index
    %2 = vector.load %arg3[%c0_4, %c16] : memref<16x34xf32, #tpu.memory_space<vmem>>, vector<16x1xf32>
    %3 = vector.shape_cast %2 : vector<16x1xf32> to vector<1x16x1xf32>
    %c0_5 = arith.constant 0 : index
    %c17 = arith.constant 17 : index
    %4 = vector.load %arg3[%c0_5, %c17] : memref<16x34xf32, #tpu.memory_space<vmem>>, vector<16x16xf32>
    %c0_6 = arith.constant 0 : index
    %c33 = arith.constant 33 : index
    %5 = vector.load %arg3[%c0_6, %c33] : memref<16x34xf32, #tpu.memory_space<vmem>>, vector<16x1xf32>
    %6 = vector.shape_cast %5 : vector<16x1xf32> to vector<1x16x1xf32>
    %7 = vector.shape_cast %1 : vector<16x16xf32> to vector<1x16x16xf32>
    %8 = vector.shape_cast %4 : vector<16x16xf32> to vector<1x16x16xf32>
    "tpu.trace_start"() <{level = 10 : i32, message = "boc,bcp->bop"}> : () -> ()
    %cst = arith.constant dense<0.000000e+00> : vector<1x16x256xf32>
    %9 = tpu.matmul %7, %0, %cst {dimension_numbers = #tpu.dot_dimension_numbers<[2], [1], [1], [2], [0, 0, 0, 1, 1, 2], [0], [0]>} : vector<1x16x16xf32>, vector<1x16x256xf32>, vector<1x16x256xf32> -> vector<1x16x256xf32>
    "tpu.trace_stop"() : () -> ()
    %10 = vector.broadcast %3 : vector<1x16x1xf32> to vector<1x16x256xf32>
    %11 = arith.addf %9, %10 : vector<1x16x256xf32>
    %cst_7 = arith.constant 0.000000e+00 : f32
    %12 = vector.broadcast %cst_7 : f32 to vector<1x16x256xf32>
    %13 = arith.maximumf %11, %12 : vector<1x16x256xf32>
    "tpu.trace_start"() <{level = 10 : i32, message = "boc,bcp->bop"}> : () -> ()
    %cst_8 = arith.constant dense<0.000000e+00> : vector<1x16x256xf32>
    %14 = tpu.matmul %8, %13, %cst_8 {dimension_numbers = #tpu.dot_dimension_numbers<[2], [1], [1], [2], [0, 0, 0, 1, 1, 2], [0], [0]>} : vector<1x16x16xf32>, vector<1x16x256xf32>, vector<1x16x256xf32> -> vector<1x16x256xf32>
    "tpu.trace_stop"() : () -> ()
    %15 = vector.broadcast %6 : vector<1x16x1xf32> to vector<1x16x256xf32>
    %16 = arith.addf %14, %15 : vector<1x16x256xf32>
    %cst_9 = arith.constant 0.000000e+00 : f32
    %17 = vector.broadcast %cst_9 : f32 to vector<1x16x256xf32>
    %18 = arith.maximumf %16, %17 : vector<1x16x256xf32>
    %c0_10 = arith.constant 0 : index
    %c0_11 = arith.constant 0 : index
    %c0_12 = arith.constant 0 : index
    %19 = vector.load %arg4[%c0_10, %c0_11, %c0_12] : memref<1x16x256xf32, #tpu.memory_space<vmem>>, vector<1x16x256xf32>
    tpu.vector_store %arg4[%c0_10, %c0_11, %c0_12], %18 {strides = array<i32>} : memref<1x16x256xf32, #tpu.memory_space<vmem>>, vector<1x16x256xf32>,
    return
  }
  func.func @transform_0(%arg0: i32, %arg1: i32) -> (i32, i32, i32) {
    %c0_i32 = arith.constant 0 : i32
    %c0_i32_0 = arith.constant 0 : i32
    return %arg0, %c0_i32, %arg1 : i32, i32, i32
  }
  func.func @transform_1(%arg0: i32, %arg1: i32) -> (i32, i32) {
    %c0_i32 = arith.constant 0 : i32
    %c0_i32_0 = arith.constant 0 : i32
    %c0_i32_1 = arith.constant 0 : i32
    return %c0_i32, %c0_i32_0 : i32, i32
  }
  func.func @transform_2(%arg0: i32, %arg1: i32) -> (i32, i32, i32) {
    %c0_i32 = arith.constant 0 : i32
    %c0_i32_0 = arith.constant 0 : i32
    return %arg0, %c0_i32, %arg1 : i32, i32, i32
  }
}

</mosaic_0001>

<bundles_post_ra>
// kernel: tpu_custom_call.1
= control target key start
LH: loop header
LB: loop body
LE: loop exit
PB: predicated region body
PF: predicated region fallthrough
CT: control target
= control target key end

     0   :  { %7 = vsyncpa [#allocation3], 0  ;;  %s1031_s0 = inlined_call_operand.hbm [shape: f32[2,16,256], index: 0, kind: input, shape index: {}]   ;;  %s1032_s1 = inlined_call_operand.hbm [shape: f32[16,34], index: 1, kind: input, shape index: {}]   ;;  %s1033_s2 = inlined_call_operand.hbm [shape: f32[2,16,256], index: 2, kind: output, shape index: {}]  }
   0x1   :  { %9 = vsyncpa [#allocation3 + $0x1], 0 }
   0x2   :  { %10 = vsyncpa [#allocation6], 0 }
   0x3   :  { %11 = vsyncpa [#allocation4], 0 }
   0x4   :  { %13 = vsyncpa [#allocation4 + $0x1], 0  ;;  %s804_s9 = smov 0   ;;  %s806_s10 = smov 0  }
   0x5   :  { %s808_s11 = smov 0   ;;  %s810_s12 = smov 0  }
   0x6   :  { %s812_s13 = smov 0   ;;  %s814_s14 = smov 0  }
   0x7 LB: > { %s513_s15 = sadd.s32 4294967295, %s774_s14   ;;  %s514_s16 = sadd.s32 4294967294, %s774_s14   ;;  %s774_s14 = sphi %s814_s14, %s19_s14   ;;  %s770_s13 = sphi %s812_s13, %s1057_s13   ;;  %s766_s12 = sphi %s810_s12, %s1056_s12   ;;  %s762_s11 = sphi %s808_s11, %s1055_s11   ;;  %s758_s10 = sphi %s806_s10, %s1054_s10   ;;  %s754_s9 = sphi %s804_s9, %s1053_s9  }
   0x8   : > { %p53_p0 = scmp.ne.s32.totalorder %s758_s10, %s754_s9  ;;  %p838_p1 = scmp.eq.s32.totalorder %s513_s15, 0 }
   0x9   : > { %p842_p2 = scmp.eq.s32.totalorder %s513_s15, 1  ;;  %p106_p3 = scmp.eq.s32.totalorder %s514_s16, 1 }
   0xa   : > { %s1038_s17 = scalar_select %p838_p1, 1, 0 }
   0xb   : > { %s1039_s18 = scalar_select %p842_p2, 1, 0 }
   0xc   : > { %p848_p4 = por %p838_p1, %p53_p0  ;;  %p515_p5 = scmp.ge.s32.totalorder %s774_s14, 1 }
   0xd   : > { %p853_p6 = por %p106_p3, %p53_p0  ;;  %p113_p7 = scmp.lt.s32.totalorder %s774_s14, 3 }
   0xe   : > { %s1040_s19 = scalar_select %p848_p4, 1, 0 }
   0xf   : > { %s1041_s20 = scalar_select %p853_p6, 1, 0 }
  0x10   : > { %p858_p8 = pnand %p515_p5, %p113_p7  ;;  %s776_s22 = smov [#allocation5]  }
  0x11   : > { %s125_s23 = sshll.u32 %s776_s22, 4  ;;  %s31_s25 = sadd.s32 1, %s770_s13  ;;  %s126_s23 = int_to_ptr.vmem [resolvable:$true] %s125_s23 }
  0x12   : > { %s1042_s21 = scalar_select %p858_p8, 1, 0 }
  0x13   : > { %p552_p9 = pneg %p858_p8  ;;  %s630_s28 = scalar_lea.hbm %s1032_s1, 256 }
  0x14   : > { %p631_p12 = scmp.ne.s32.totalorder %s1032_s1, %s630_s28  ;;  %p637_p5 = scmp.lt.u32.totalorder %s630_s28, %s1032_s1 }
  0x15   : > { %p867_p11 = pnand %p552_p9, %p838_p1 }
  0x17   : > { %p632_p13 = pneg %p867_p11 }
  0x19   : > { %p633_p0 = pnand %p632_p13, %p631_p12 }
  0x1b   : > { %p634_p3 = pneg %p633_p0 }
  0x1d   : > { %p639_p7 = pnand %p637_p5, %p634_p3 }
  0x1f   : > { %642 = shalt.err (!%p639_p7)
}
  0x20   : > { %s643_s5 = scalar_lea.vmem %s126_s23, 256  ;;  %p651_p1 = scmp.lt.s32.totalorder %s126_s23, %s126_s23 }
  0x21   : > { %p644_p9 = scmp.ne.s32.totalorder %s126_s23, %s643_s5  ;;  %p652_p4 = scmp.lt.s32.totalorder %s643_s5, %s643_s5 }
  0x23   : > { %p646_p10 = pnand %p644_p9, %p632_p13  ;;  %p653_p8 = por %p652_p4, %p651_p1 }
  0x25   : > { %p647_p6 = pneg %p646_p10 }
  0x27   : > { %p654_p2 = pnand %p653_p8, %p647_p6 }
  0x29   : > { %657 = shalt.err (!%p654_p2)
}
  0x2a   : > { %s777_s6 = smov 128   ;;  %s778_s7 = smov 8  }
  0x2b   : > { %555 = dma.hbm_to_vmem [thread:$0]  (!%p867_p11), %s1032_s1, 256, %s126_s23, [#allocation6], %s777_s6, %s777_s6, %s778_s7  }
  0x2c   : > { %p33_p1 = scmp.ge.s32.totalorder %s31_s25, 2  ;;  %s40_s16 = sadd.s32 1, %s762_s11 }
  0x2d   : > { %p47_p2 = scmp.ne.s32.totalorder %s762_s11, %s758_s10  ;;  %p48_p4 = scmp.eq.s32.totalorder %s774_s14, 0 }
  0x2e   : > { %s1059_s25 = smov (%p33_p1, %s31_s25), 0  ;;  %p1045_p8 = scmp.ne.s32.totalorder %s1039_s18, 0 }
  0x2f   : > { %p894_p6 = por %p48_p4, %p47_p2  ;;  %s35_s24 = ssub.s32 %s770_s13, %s1059_s25 }
  0x30   : > { %p900_p10 = por %p1045_p8, %p47_p2  ;;  %p565_p12 = scmp.lt.s32.totalorder %s774_s14, 2 }
  0x31   : > { %p38_p11 = scmp.eq.s32.totalorder %s35_s24, 0  ;;  %s139_s23 = sand.u32 1, %s762_s11  }
  0x32   : > { %s518_s27 = sshll.u32 %s139_s23, 5  ;;  %s534_s29 = sshll.u32 %s770_s13, 9 }
  0x33   : > { %s909_s28 = scalar_select %p38_p11, %s762_s11, %s40_s16  }
  0x34   : > { %s915_s4 = scalar_lea.hbm %s1031_s0, %s534_s29  ;;  %s143_s18 = scalar_lea.vmem [#allocation2], %s518_s27 }
  0x35   : > { %s152_s5 = sshll.u32 %s143_s18, 4  ;;  %p921_p13 = pnand %p565_p12, %p894_p6  ;;  %s917_s5 = int_to_ptr.vmem [resolvable:$true] %s152_s5 }
  0x36   : > { %s925_s7 = scalar_lea.sflag [#allocation3], %s139_s23  ;;  %s658_s8 = scalar_lea.hbm %s915_s4, 512 }
  0x37   : > { %p659_p0 = scmp.ne.s32.totalorder %s915_s4, %s658_s8  ;;  %p660_p3 = pneg %p921_p13 }
  0x38   : > { %s663_s22 = scalar_lea.hbm %s1031_s0, 1024  ;;  %p664_p9 = scmp.lt.u32.totalorder %s915_s4, %s1031_s0 }
  0x39   : > { %p661_p5 = pnand %p660_p3, %p659_p0  ;;  %p665_p1 = scmp.lt.u32.totalorder %s663_s22, %s658_s8 }
  0x3a   : > { %p667_p4 = scmp.lt.u32.totalorder %s658_s8, %s915_s4 }
  0x3b   : > { %p662_p7 = pneg %p661_p5  ;;  %p666_p2 = por %p665_p1, %p664_p9 }
  0x3d   : > { %p668_p6 = por %p667_p4, %p666_p2 }
  0x3f   : > { %p669_p8 = pnand %p668_p6, %p662_p7 }
  0x41   : > { %672 = shalt.err (!%p669_p8)
}
  0x42   : > { %s673_s23 = scalar_lea.vmem %s917_s5, 512  ;;  %s779_s29 = smov [#allocation2]  }
  0x43   : > { %p674_p12 = scmp.ne.s32.totalorder %s917_s5, %s673_s23  ;;  %s678_s30 = sshll.u32 %s779_s29, 4  ;;  %s679_s30 = int_to_ptr.vmem [resolvable:$false] %s678_s30 }
  0x44   : > { %s680_s3 = scalar_lea.vmem %s679_s30, 1024  ;;  %p681_p5 = scmp.lt.s32.totalorder %s917_s5, %s679_s30 }
  0x45   : > { %p676_p11 = pnand %p674_p12, %p660_p3  ;;  %p682_p9 = scmp.lt.s32.totalorder %s680_s3, %s673_s23 }
  0x47   : > { %p677_p0 = pneg %p676_p11  ;;  %p683_p1 = por %p682_p9, %p681_p5 }
  0x49   : > { %p684_p2 = pnand %p683_p1, %p677_p0 }
  0x4b   : > { %687 = shalt.err (!%p684_p2)
}
  0x4c   : > { %s780_s18 = smov 256   ;;  %s781_s8 = smov 16  }
  0x4d   : > { %559 = dma.hbm_to_vmem [thread:$0]  (!%p921_p13), %s915_s4, 512, %s917_s5, %s925_s7, %s780_s18, %s780_s18, %s781_s8  }
  0x4e   : > { %p1048_p3 = scmp.ne.s32.totalorder %s1042_s21, 0 }
  0x4f   : > { %s956_s15 = sand.u32 (!%p1048_p3), 1, %s758_s10   ;;  %p1049_p7 = scmp.ne.s32.totalorder (!%p1048_p3), %s1040_s19, 0 }
  0x50   : > { %164 = sbr.rel (%p1048_p3) target bundleno = 562 (0x232), region = 28  ;;  %s522_s16 = sshll.u32 (!%p1048_p3), %s956_s15, 5 }
  0x51   : > { %s167_s22 = scalar_lea.sflag (!%p1048_p3), [#allocation3], %s956_s15  ;;  %s170_s24 = scalar_lea.vmem (!%p1048_p3), [#allocation2], %s522_s16 }
  0x57   : > { %741 = dma.done.wait (%p1049_p7), %s167_s22, 512  }
  0x58   : > { %743 = vsyncadd (%p1049_p7), %s167_s22, 4294966784  ;;  %p1050_p13 = scmp.ne.s32.totalorder %s1038_s17, 0 }
  0x5a   : > { %745 = dma.done.wait (%p1050_p13), [#allocation6], 256  }
  0x5b   : > { %747 = vsyncadd (%p1050_p13), [#allocation6], 4294967040  ;;  %v782_v0 = vmov 0.0   ;;  %v783_v1 = vmov 16   ;;  %v198_v2 = vld [vmem:[%s170_s24 + $0x8] sm:$0xff]  ;;  %v200_v3 = vld [vmem:[%s170_s24 + $0x18] sm:$0xff] }
  0x5c   : > { %282 = vmatprep.mubr.f32.mxu0 %v782_v0  ;;  %627 = vset.pattern.permute.xlu0 %v783_v1  ;;  %v197_v4 = vld [vmem:[%s170_s24] sm:$0xff]  ;;  %v536_v5 = vpack.c.bf16 %v200_v3, %v198_v2  ;;  %v199_v6 = vld [vmem:[%s170_s24 + $0x10] sm:$0xff]  ;;  %s784_s19 = smov 111   ;;  %vm213_vm0 = vcmask 130048   ;;  %v202_v9 = vld [vmem:[#allocation5 + $0x8] sm:$0xff]  ;;  %v785_v10 = vmov 33  }
  0x5d   : > { %379 = vmatprep.mubr.f32.mxu1 %v782_v0  ;;  %v201_v7 = vld [vmem:[#allocation5] sm:$0xff]  ;;  %v538_v8 = vpack.c.bf16 %v199_v6, %v197_v4  ;;  %629 = vset.pattern.permute.xlu1 %v785_v10  ;;  %s194_s17 = scalar_lea.vmem [#allocation7], %s522_s16  ;;  %s535_s4 = sshll.u32 %s766_s12, 9 }
  0x5e   : > { %205 = vperm.xlu0 %627, %v201_v7   ;;  %307 = vrot.lane.b32.xlu1 %v201_v7, %s784_s19  ;;  %s416_s21 = sshll.u32 %s194_s17, 4  ;;  %s982_s7 = scalar_lea.hbm %s1033_s2, %s535_s4  ;;  %s977_s21 = int_to_ptr.vmem [resolvable:$true] %s416_s21 }
  0x5f   : > { %537 = vmatprep.subr.bf16.mxu0 %v536_v5  ;;  %s401_s12 = scalar_lea.sflag [#allocation4], %s956_s15  ;;  %s688_s27 = scalar_lea.vmem %s977_s21, 512 }
  0x60   : > { %539 = vmatpush1.bf16.msra.mxu0 %v538_v8  ;;  %p689_p4 = scmp.ne.s32.totalorder %s977_s21, %s688_s27  ;;  %s786_s23 = smov [#allocation7]  }
  0x61   : > { %s692_s29 = sshll.u32 %s786_s23, 4  ;;  %s693_s29 = int_to_ptr.vmem [resolvable:$false] %s692_s29 }
  0x62   : > { %210 = vperm.xlu0 %627, %v202_v9   ;;  %309 = vrot.lane.b32.xlu1 %v202_v9, %s784_s19  ;;  %p690_p6 = pnand %p689_p4, %p900_p10  ;;  %s694_s30 = scalar_lea.vmem %s693_s29, 1024 }
  0x63   : > { %525 = vmatmul.mubr.msk.f32.vlgmr.msra.gmra.mrb[0].mxu0 %vm213_vm0, %v201_v7  ;;  %p695_p12 = scmp.lt.s32.totalorder %s977_s21, %s693_s29  ;;  %p696_p11 = scmp.lt.s32.totalorder %s694_s30, %s688_s27 }
  0x64   : > { %288 = vmatprep.mubr.f32.mxu0 %v782_v0  ;;  %p691_p8 = pneg %p690_p6 }
  0x65   : > { %p697_p0 = por %p696_p11, %p695_p12 }
  0x66   : > { %628 = vset.pattern.permute.xlu0 %v785_v10  ;;  %304 = vperm.xlu1 %629, %v202_v9  }
  0x67   : > { %526 = vmatmul.mubr.msk.f32.gmra.mrb[2].mxu0 %vm213_vm0, %v202_v9  ;;  %300 = vperm.xlu0 %628, %v201_v7   ;;  %p698_p5 = pnand %p697_p0, %p691_p8 }
  0xd0   : > { %v308_v27 = vpop.permute.xlu1 %307 }
  0xd4   : > { %v310_v28 = vpop.permute.xlu1 %309 }
  0xdd   : > { %v206_v11 = vpop.permute.xlu0 %205 }
  0xe1   : > { %v211_v15 = vpop.permute.xlu0 %210 }
  0xe5   : > { %v305_v34 = vpop.permute.xlu1 %304 }
  0xe6   : > { %v301_v29 = vpop.permute.xlu0 %300 }
 0x136   : > { %v284_v12 = vpop.f32.mrb[0].mxu0 }
 0x137   : > { %v286_v13 = vpop.f32.mrb[1].mxu0  ;;  %v285_v14 = vadd.f32 %v284_v12, %v206_v11 }
 0x138   : > { %v287_v16 = vadd.f32 %v286_v13, %v206_v11 }
 0x139   : > { %v295_v21 = vmax.f32 %v285_v14, 0.0 }
 0x13a   : > { %v290_v17 = vpop.f32.mrb[2].mxu0  ;;  %v296_v23 = vmax.f32 %v287_v16, 0.0 }
 0x13b   : > { %v291_v18 = vadd.f32 %v290_v17, %v211_v15  ;;  %v292_v19 = vpop.f32.mrb[3].mxu0 }
 0x13c   : > { %v293_v20 = vadd.f32 %v292_v19, %v211_v15 }
 0x13d   : > { %v297_v22 = vmax.f32 %v291_v18, 0.0 }
 0x13e   : > { %v298_v24 = vmax.f32 %v293_v20, 0.0 }
 0x13f   : > { %v542_v25 = vpack.c.bf16 %v297_v22, %v295_v21 }
 0x140   : > { %v540_v26 = vpack.c.bf16 %v298_v24, %v296_v23 }
 0x142   : > { %541 = vmatprep.subr.bf16.mxu1 %v540_v26 }
 0x143   : > { %543 = vmatpush1.bf16.msra.mxu1 %v542_v25 }
 0x146   : > { %527 = vmatmul.mubr.msk.f32.vlgmr.msra.gmra.mrb[0].mxu1 %vm213_vm0, %v308_v27 }
 0x147   : > { %385 = vmatprep.mubr.f32.mxu1 %v782_v0 }
 0x14a   : > { %528 = vmatmul.mubr.msk.f32.gmra.mrb[2].mxu1 %vm213_vm0, %v310_v28 }
 0x219   : > { %v381_v30 = vpop.f32.mrb[0].mxu1 }
 0x21a   : > { %v382_v31 = vadd.f32 %v381_v30, %v301_v29  ;;  %v383_v32 = vpop.f32.mrb[1].mxu1 }
 0x21b   : > { %v384_v33 = vadd.f32 %v383_v32, %v301_v29 }
 0x21c   : > { %v392_v35 = vmax.f32 %v382_v31, 0.0 }
 0x21d   : > { %v393_v36 = vmax.f32 %v384_v33, 0.0  ;;  %v387_v37 = vpop.f32.mrb[2].mxu1 }
 0x21e   : > { %396 = vst [vmem:[%s194_s17] sm:$0xff] %v392_v35  ;;  %v388_v38 = vadd.f32 %v387_v37, %v305_v34  ;;  %v389_v39 = vpop.f32.mrb[3].mxu1 }
 0x21f   : > { %397 = vst [vmem:[%s194_s17 + $0x8] sm:$0xff] %v393_v36  ;;  %v390_v40 = vadd.f32 %v389_v39, %v305_v34 }
 0x220   : > { %v394_v41 = vmax.f32 %v388_v38, 0.0 }
 0x221   : > { %v395_v42 = vmax.f32 %v390_v40, 0.0 }
 0x222   : > { %398 = vst [vmem:[%s194_s17 + $0x10] sm:$0xff] %v394_v41 }
 0x223   : > { %399 = vst [vmem:[%s194_s17 + $0x18] sm:$0xff] %v395_v42 }
 0x224   : > { %701 = shalt.err (!%p698_p5)
}
 0x225   : > { %s702_s3 = scalar_lea.hbm %s982_s7, 512  ;;  %s706_s16 = scalar_lea.hbm %s1033_s2, 1024 }
 0x226   : > { %p703_p9 = scmp.ne.s32.totalorder %s982_s7, %s702_s3  ;;  %p707_p3 = scmp.lt.u32.totalorder %s982_s7, %s1033_s2 }
 0x227   : > { %p708_p7 = scmp.lt.u32.totalorder %s706_s16, %s702_s3  ;;  %p710_p4 = scmp.lt.u32.totalorder %s702_s3, %s982_s7 }
 0x228   : > { %p704_p1 = pnand %p703_p9, %p900_p10 }
 0x229   : > { %p709_p13 = por %p708_p7, %p707_p3 }
 0x22a   : > { %p705_p2 = pneg %p704_p1 }
 0x22b   : > { %p711_p6 = por %p710_p4, %p709_p13 }
 0x22d   : > { %p712_p8 = pnand %p711_p6, %p705_p2 }
 0x22f   : > { %715 = shalt.err (!%p712_p8)
}
 0x230   : > { %s787_s19 = smov 256   ;;  %s788_s17 = smov 16  }
 0x231   : > { %550 = dma.vmem_to_hbm [thread:$0]  (%p900_p10), %s977_s21, 512, %s982_s7, %s401_s12, %s787_s19, %s787_s19, %s788_s17  }
 0x232 PF: > { %s431_s4 = sand.u32 1, %s754_s9   ;;  %p1051_p12 = scmp.ne.s32.totalorder %s1041_s20, 0 }
 0x233   : > { %p1052_p11 = scmp.ge.s32.totalorder %s774_s14, 2  ;;  %s432_s5 = scalar_lea.sflag [#allocation4], %s431_s4 }
 0x235   : > { %p561_p0 = pnand %p1052_p11, %p1051_p12 }
 0x237   : > { %749 = dma.done.wait (!%p561_p0), %s432_s5, 512  }
 0x238   : > { %751 = vsyncadd (!%p561_p0), %s432_s5, 4294966784  ;;  %s19_s14 = sadd.s32 1, %s774_s14   ;;  %s1053_s9 = smov %s758_s10 }
 0x239   : > { %p16_p5 = scmp.ge.s32.totalorder %s19_s14, 4   ;;  %s1054_s10 = smov %s762_s11 }
 0x23a   : > { %s1055_s11 = smov %s909_s28  ;;  %s1056_s12 = smov %s770_s13 }
 0x23b   : > { %s1057_s13 = smov %s1059_s25  ;;  %18 = sbr.rel (!%p16_p5) target bundleno = 7 (0x7), region = 77 }
 0x242   :  { %437 = vsyncpa [#allocation3], 1 }
 0x243   :  { %439 = vsyncpa [#allocation3 + $0x1], 1 }
 0x244   :  { %440 = vsyncpa [#allocation6], 1 }
 0x245   :  { %441 = vsyncpa [#allocation4], 1 }
 0x246   :  { %443 = vsyncpa [#allocation4 + $0x1], 1 }

</bundles_post_ra>
